<compile_context>
chip_gen: v7x
topology: tpu7x:2x2x1
jax: 0.10.0
libtpu: 0.0.40
codegen_flags: <defaults>
</compile_context>

<pallas_src>
import math

import jax
import jax.numpy as jnp
from jax.experimental import pallas as pl
from jax.experimental.pallas import tpu as pltpu


def _round_up(n: int, m: int) -> int:
    return ((n + m - 1) // m) * m


def _lora_kernel(alpha_ref, x_ref, a_ref, b_ref, o_ref, xa_ref):
    """Grid = (M tiles, N tiles).  xa_ref holds alpha * (x @ A) for the current
    batch tile; it is computed once at j == 0 and reused for every out_dim tile."""
    j = pl.program_id(1)

    @pl.when(j == 0)
    def _compute_xa():
        xa = jnp.dot(x_ref[...], a_ref[...], preferred_element_type=jnp.float32)
        # Scale the small (tm, rank) intermediate instead of the (tm, out) output.
        xa_ref[...] = xa * alpha_ref[0]

    o_ref[...] = jnp.dot(
        xa_ref[...].astype(b_ref.dtype), b_ref[...],
        preferred_element_type=jnp.float32,
    ).astype(o_ref.dtype)


def _vmem_budget():
    """(tile budget bytes, requested vmem_limit_bytes) with generation-aware headroom."""
    try:
        cap = int(pltpu.get_tpu_info().vmem_capacity_bytes)
    except Exception:
        cap = 64 * 1024 * 1024  # conservative (v7x per-core) fallback
    limit = max(32 * 1024 * 1024, cap - 16 * 1024 * 1024)   # leave compiler headroom
    budget = max(24 * 1024 * 1024, limit - 8 * 1024 * 1024)  # headroom under the limit
    return budget, limit


def _pick_tiles(batch, in_dim, rank, out_dim, x_isz, a_isz, b_isz, o_isz,
                block_m, block_n, budget):
    """Choose (tm, bn).  in_dim is never tiled; out_dim is tiled when large so tm
    can stay big; shrink whichever tile term dominates if VMEM is still tight."""
    tm = max(8, min(block_m, _round_up(batch, 8)))
    # v7x megacore: prefer >= 2 tiles on the parallel (batch) axis when the batch
    # is large enough to split (costs one extra, still-big grid step on 1-TC chips).
    if batch > 256 and pl.cdiv(batch, tm) < 2:
        tm = max(8, _round_up(pl.cdiv(batch, 2), 8))

    bn = out_dim if out_dim <= block_n else block_n  # block_n is a multiple of 128

    def vmem_bytes(tm_, bn_):
        # Account for internal (8, 128) layout padding; inputs/outputs are
        # double-buffered by the BlockSpec pipeline, the xa scratch is not.
        x_t = 2 * _round_up(tm_, 8) * _round_up(in_dim, 128) * x_isz
        a_t = 2 * _round_up(in_dim, 8) * _round_up(rank, 128) * a_isz
        b_t = 2 * _round_up(rank, 8) * _round_up(bn_, 128) * b_isz
        o_t = 2 * _round_up(tm_, 8) * _round_up(bn_, 128) * o_isz
        xa = _round_up(tm_, 8) * _round_up(rank, 128) * 4
        return x_t + a_t + b_t + o_t + xa

    while vmem_bytes(tm, bn) > budget and (tm > 8 or bn > 128):
        x_term = _round_up(tm, 8) * _round_up(in_dim, 128) * x_isz
        o_term = _round_up(tm, 8) * _round_up(bn, 128) * o_isz
        if bn > 128 and (o_term >= x_term or tm <= 8):
            bn = max(128, _round_up(bn // 2, 128))
        elif tm > 8:
            tm = max(8, _round_up(tm // 2, 8))
        else:
            break
    # TODO(synk): for extremely large in_dim (tm forced tiny) split into two
    # pallas_calls (x@A with K tiling, then xa@B) instead of shrinking tm further.
    return tm, bn


def lora_forward(x, A, B, alpha, *, block_m=512, block_n=512):
    """Pallas equivalent of LoRALayer.forward: alpha * (x @ A @ B)."""
    batch, in_dim = x.shape
    in_dim_a, rank = A.shape
    rank_b, out_dim = B.shape
    assert in_dim_a == in_dim and rank_b == rank

    budget, vmem_limit = _vmem_budget()
    tm, bn = _pick_tiles(
        batch, in_dim, rank, out_dim,
        jnp.dtype(x.dtype).itemsize, jnp.dtype(A.dtype).itemsize,
        jnp.dtype(B.dtype).itemsize, jnp.dtype(x.dtype).itemsize,
        block_m, block_n, budget,
    )

    grid = (pl.cdiv(batch, tm), pl.cdiv(out_dim, bn))

    # Runtime SMEM scalar: no retrace/recompile per distinct alpha value.
    alpha_arr = jnp.asarray([alpha], dtype=jnp.float32)

    return pl.pallas_call(
        _lora_kernel,
        out_shape=jax.ShapeDtypeStruct((batch, out_dim), x.dtype),
        grid_spec=pltpu.PrefetchScalarGridSpec(
            num_scalar_prefetch=0,
            grid=grid,
            in_specs=[
                pl.BlockSpec(memory_space=pltpu.MemorySpace.SMEM),    # alpha
                pl.BlockSpec((tm, in_dim), lambda i, j: (i, 0)),      # x tile (per i)
                pl.BlockSpec((in_dim, rank), lambda i, j: (0, 0)),    # A (resident)
                pl.BlockSpec((rank, bn), lambda i, j: (0, j)),        # B tile
            ],
            out_specs=pl.BlockSpec((tm, bn), lambda i, j: (i, j)),
            scratch_shapes=[pltpu.VMEM((tm, rank), jnp.float32)],     # xa scratch
        ),
        compiler_params=pltpu.CompilerParams(
            dimension_semantics=("parallel", "arbitrary"),
            vmem_limit_bytes=vmem_limit,
        ),
    )(alpha_arr, x, A, B)


def init_lora_params(key, in_dim: int, rank: int, out_dim: int):
    """Deterministic re-implementation of the module's __init__.

    A: kaiming_uniform_(a=sqrt(5)) on (in_dim, rank) -> fan_in = rank,
       bound = sqrt(1/3) * sqrt(3/rank) = 1/sqrt(rank), U(-bound, bound).
    B: zeros (rank, out_dim).
    """
    bound = 1.0 / math.sqrt(rank)
    A = jax.random.uniform(
        key, (in_dim, rank), minval=-bound, maxval=bound, dtype=jnp.float32
    )
    B = jnp.zeros((rank, out_dim), dtype=jnp.float32)
    return A, B


if __name__ == "__main__":
    key = jax.random.PRNGKey(0)
    kx, ka, kb, kx2, ka2, kb2, kx3, ka3, kb3 = jax.random.split(key, 9)

    # 1) Faithful module init (B = zeros) at small module-consistent shapes.
    batch, in_dim, rank, out_dim, alpha = 8, 32, 8, 32, 4.0
    x = jax.random.normal(kx, (batch, in_dim), dtype=jnp.float32)
    A, B0 = init_lora_params(ka, in_dim, rank, out_dim)
    out0 = lora_forward(x, A, B0, alpha)
    jax.block_until_ready(out0)
    assert out0.shape == (batch, out_dim)
    assert jnp.allclose(out0, alpha * (x @ A @ B0), atol=1e-5), "zero-B mismatch"

    # 2) Non-zero B (as if after training): full compute path.
    B1 = 0.1 * jax.random.normal(kb, (rank, out_dim), dtype=jnp.float32)
    out1 = lora_forward(x, A, B1, alpha)
    jax.block_until_ready(out1)
    assert jnp.allclose(out1, alpha * (x @ A @ B1), atol=1e-4, rtol=1e-4), \
        "random-B mismatch"

    # 3) Ragged shapes: batch % 8 != 0 and out_dim % 128 != 0 exercise the no-pad /
    #    partial-block path, plus a different alpha without recompiling for it.
    b2, d_in2, r2, d_out2, alpha2 = 10, 160, 4, 48, 0.5
    x2 = jax.random.normal(kx2, (b2, d_in2), dtype=jnp.float32)
    A2 = jax.random.normal(ka2, (d_in2, r2), dtype=jnp.float32) / math.sqrt(d_in2)
    B2 = jax.random.normal(kb2, (r2, d_out2), dtype=jnp.float32) / math.sqrt(r2)
    out2 = lora_forward(x2, A2, B2, alpha2)
    jax.block_until_ready(out2)
    assert out2.shape == (b2, d_out2)
    assert jnp.allclose(out2, alpha2 * (x2 @ A2 @ B2), atol=1e-4, rtol=1e-4), \
        "ragged-shape mismatch"

    # 4) Force M and N tiling at small shapes (batch not a multiple of the M tile,
    #    two out_dim tiles) to exercise the xa-scratch reuse across the N axis.
    b3, d_in3, r3, d_out3, alpha3 = 24, 128, 8, 256, 1.5
    x3 = jax.random.normal(kx3, (b3, d_in3), dtype=jnp.float32)
    A3 = jax.random.normal(ka3, (d_in3, r3), dtype=jnp.float32) / math.sqrt(d_in3)
    B3 = jax.random.normal(kb3, (r3, d_out3), dtype=jnp.float32) / math.sqrt(r3)
    out3 = lora_forward(x3, A3, B3, alpha3, block_m=16, block_n=128)
    jax.block_until_ready(out3)
    assert out3.shape == (b3, d_out3)
    assert jnp.allclose(out3, alpha3 * (x3 @ A3 @ B3), atol=1e-4, rtol=1e-4), \
        "tiled-grid mismatch"

    print("KERNEL_OK")
</pallas_src>

<mosaic_0001>
module attributes {stable_mosaic.version = 11 : i64} {
  func.func @_lora_kernel(%arg0: i32, %arg1: i32, %arg2: memref<1xf32, #tpu.memory_space<smem>>, %arg3: memref<8x32xf32, #tpu.memory_space<vmem>>, %arg4: memref<32x8xf32, #tpu.memory_space<vmem>>, %arg5: memref<8x32xf32, #tpu.memory_space<vmem>>, %arg6: memref<8x32xf32, #tpu.memory_space<vmem>>, %arg7: memref<8x8xf32, #tpu.memory_space<vmem>>) attributes {dimension_semantics = [#tpu.dimension_semantics<parallel>, #tpu.dimension_semantics<arbitrary>], iteration_bounds = array<i64: 1, 1>, scalar_prefetch = 0 : i64, scratch_operands = 1 : i64, tpu.core_type = #tpu.core_type<tc>, window_params = [{transform_indices = @transform_0, window_bounds = array<i64: 1>}, {transform_indices = @transform_1, window_bounds = array<i64: 8, 32>}, {pipeline_mode = #tpu.pipeline_mode<synchronous>, transform_indices = @transform_2, window_bounds = array<i64: 32, 8>}, {transform_indices = @transform_3, window_bounds = array<i64: 8, 32>}, {transform_indices = @transform_4, window_bounds = array<i64: 8, 32>}]} {
    %c0_i32 = arith.constant 0 : i32
    %0 = arith.cmpi eq, %arg1, %c0_i32 : i32
    %1 = arith.extui %0 : i1 to i32
    %c0_i32_0 = arith.constant 0 : i32
    %2 = arith.cmpi ne, %1, %c0_i32_0 : i32
    scf.if %2 {
      %c0_6 = arith.constant 0 : index
      %c0_7 = arith.constant 0 : index
      %7 = vector.load %arg3[%c0_6, %c0_7] : memref<8x32xf32, #tpu.memory_space<vmem>>, vector<8x32xf32>
      %c0_8 = arith.constant 0 : index
      %c0_9 = arith.constant 0 : index
      %8 = vector.load %arg4[%c0_8, %c0_9] : memref<32x8xf32, #tpu.memory_space<vmem>>, vector<32x8xf32>
      %cst_10 = arith.constant dense<0.000000e+00> : vector<8x8xf32>
      %9 = tpu.matmul %7, %8, %cst_10 {dimension_numbers = #tpu.dot_dimension_numbers<[1], [0], [0], [1], [0, 0, 1, 1], [], []>} : vector<8x32xf32>, vector<32x8xf32>, vector<8x8xf32> -> vector<8x8xf32>
      %c0_11 = arith.constant 0 : index
      %10 = memref.load %arg2[%c0_11] : memref<1xf32, #tpu.memory_space<smem>>
      %11 = vector.broadcast %10 : f32 to vector<8x8xf32>
      %12 = arith.mulf %9, %11 : vector<8x8xf32>
      %c0_12 = arith.constant 0 : index
      %c0_13 = arith.constant 0 : index
      %13 = vector.load %arg7[%c0_12, %c0_13] : memref<8x8xf32, #tpu.memory_space<vmem>>, vector<8x8xf32>
      tpu.vector_store %arg7[%c0_12, %c0_13], %12 {strides = array<i32>} : memref<8x8xf32, #tpu.memory_space<vmem>>, vector<8x8xf32>,
    } else {
    }
    %c0 = arith.constant 0 : index
    %c0_1 = arith.constant 0 : index
    %3 = vector.load %arg7[%c0, %c0_1] : memref<8x8xf32, #tpu.memory_space<vmem>>, vector<8x8xf32>
    %c0_2 = arith.constant 0 : index
    %c0_3 = arith.constant 0 : index
    %4 = vector.load %arg5[%c0_2, %c0_3] : memref<8x32xf32, #tpu.memory_space<vmem>>, vector<8x32xf32>
    %cst = arith.constant dense<0.000000e+00> : vector<8x32xf32>
    %5 = tpu.matmul %3, %4, %cst {dimension_numbers = #tpu.dot_dimension_numbers<[1], [0], [0], [1], [0, 0, 1, 1], [], []>} : vector<8x8xf32>, vector<8x32xf32>, vector<8x32xf32> -> vector<8x32xf32>
    %c0_4 = arith.constant 0 : index
    %c0_5 = arith.constant 0 : index
    %6 = vector.load %arg6[%c0_4, %c0_5] : memref<8x32xf32, #tpu.memory_space<vmem>>, vector<8x32xf32>
    tpu.vector_store %arg6[%c0_4, %c0_5], %5 {strides = array<i32>} : memref<8x32xf32, #tpu.memory_space<vmem>>, vector<8x32xf32>,
    return
  }
  func.func @transform_0(%arg0: i32, %arg1: i32) -> i32 {
    %c0_i32 = arith.constant 0 : i32
    %c0_i32_0 = arith.constant 0 : i32
    return %c0_i32 : i32
  }
  func.func @transform_1(%arg0: i32, %arg1: i32) -> (i32, i32) {
    %c0_i32 = arith.constant 0 : i32
    %c0_i32_0 = arith.constant 0 : i32
    return %arg0, %c0_i32 : i32, i32
  }
  func.func @transform_2(%arg0: i32, %arg1: i32) -> (i32, i32) {
    %c0_i32 = arith.constant 0 : i32
    %c0_i32_0 = arith.constant 0 : i32
    %c0_i32_1 = arith.constant 0 : i32
    return %c0_i32, %c0_i32_0 : i32, i32
  }
  func.func @transform_3(%arg0: i32, %arg1: i32) -> (i32, i32) {
    %c0_i32 = arith.constant 0 : i32
    %c0_i32_0 = arith.constant 0 : i32
    return %c0_i32, %arg1 : i32, i32
  }
  func.func @transform_4(%arg0: i32, %arg1: i32) -> (i32, i32) {
    %c0_i32 = arith.constant 0 : i32
    return %arg0, %arg1 : i32, i32
  }
}

</mosaic_0001>

<bundles_post_ra>
// kernel: tpu_custom_call.1
= control target key start
LH: loop header
LB: loop body
LE: loop exit
PB: predicated region body
PF: predicated region fallthrough
CT: control target
= control target key end

     0   :  { %v258_v3 = vmov 0.0|0.0   ;;  %vm259_vm0 = vmmov 0   ;;  %v260_v6 = vmov 0.0   ;;  %s322_s0 = inlined_call_operand.<no memory space> [shape: f32[1], index: 0, kind: input, shape index: {}]   ;;  %s323_s1 = inlined_call_operand.vmem [shape: f32[8,32], index: 1, kind: input, shape index: {}]   ;;  %s324_s2 = inlined_call_operand.vmem [shape: f32[32,8], index: 2, kind: input, shape index: {}]   ;;  %s325_s3 = inlined_call_operand.vmem [shape: f32[8,32], index: 3, kind: input, shape index: {}]   ;;  %s326_s4 = inlined_call_operand.hbm [shape: f32[8,32], index: 4, kind: output, shape index: {}]  }
   0x1   :  { %v24_v0 = vld [vmem:[%s324_s2] sm:$0xff]  ;;  %v25_v1 = vld [vmem:[%s324_s2 + $0x8] sm:$0xff]  ;;  %v26_v2 = vld [vmem:[%s324_s2 + $0x10] sm:$0xff]  ;;  %224 = vmatprep.subr.bf16.mxu0 %v258_v3  ;;  %216 = vmatprep.mubr.msk.f32.mxu0 %vm259_vm0, %v260_v6 }
   0x2   :  { %v225_v4 = vpack.c.bf16 %v25_v1, %v24_v0  ;;  %v27_v5 = vld [vmem:[%s324_s2 + $0x18] sm:$0xff] }
   0x3   :  { %10 = vsyncpa [#allocation5], 0  ;;  %219 = vmatprep.subr.mxu1 %v260_v6  ;;  %221 = vmatprep.mubr.msk.f32.mxu1 %vm259_vm0, %v260_v6  ;;  %v228_v7 = vpack.c.bf16 %v27_v5, %v26_v2  ;;  %v23_v8 = vld [vmem:[%s323_s1] sm:$0xff]  ;;  %vm28_vm1 = vcmask 261120   ;;  %v103_v10 = vstv %s322_s0  ;;  %vm105_vm2 = vcmask 64512   ;;  %s261_s1 = smov [#allocation4]  }
   0x4   :  { %226 = vmatpush3.bf16.msra.mxu0 %v225_v4  ;;  %v108_v9 = vld [vmem:[%s325_s3] sm:$0xff]  ;;  %s191_s28 = sshll.u32 %s261_s1, 4  ;;  %s192_s28 = int_to_ptr.vmem [resolvable:$true] %s191_s28 }
   0x5   :  { %227 = vmatprep.subr.bf16.mxu0 %v258_v3  ;;  %220 = vmatpush3.msra.mxu1 %v108_v9  ;;  %s234_s3 = scalar_lea.vmem %s192_s28, 128  ;;  %p239_p1 = scmp.lt.s32.totalorder %s192_s28, %s192_s28 }
   0x6   :  { %p235_p0 = scmp.ne.s32.totalorder %s192_s28, %s234_s3  ;;  %p240_p2 = scmp.lt.s32.totalorder %s234_s3, %s234_s3 }
   0x8   :  { %229 = vmatpush3.bf16.msra.mxu0 %v228_v7  ;;  %p241_p3 = por %p240_p2, %p239_p1 }
   0xa   :  { %p242_p4 = pnand %p241_p3, %p235_p0 }
   0xb   :  { %217 = vmatmul.mubr.msk.f32.vlgmr.msra.gmra.mrb[0].mxu0 %vm28_vm1, %v23_v8 }
  0xde   :  { %v98_v11 = vpop.f32.mrb[0].mxu0 }
  0xdf   :  { %v104_v12 = vmul.f32 %v103_v10, %v98_v11  ;;  %v218_v13 = vpop.f32.mrb[1].mxu0 }
  0xe1   :  { %106 = vst.msk [vmem:[#allocation2] sm:$0xff] %vm105_vm2, %v104_v12 }
  0xe8   :  { %v107_v14 = vld [vmem:[#allocation2] sm:$0xff] }
  0xe9   :  { %222 = vmatmul.mubr.msk.f32.vlgmr.msra.gmra.mrb[0].mxu1 %vm105_vm2, %v107_v14 }
 0x1bc   :  { %v179_v15 = vpop.f32.mrb[0].mxu1 }
 0x1bd   :  { %184 = vst.msk [vmem:[#allocation4] sm:$0xff] %vm28_vm1, %v179_v15  ;;  %v223_v16 = vpop.f32.mrb[1].mxu1 }
 0x1be   :  { %245 = shalt.err (!%p242_p4)
}
 0x1bf   :  { %s246_s30 = scalar_lea.hbm %s326_s4, 128 }
 0x1c0   :  { %p247_p5 = scmp.ne.s32.totalorder %s326_s4, %s246_s30  ;;  %p250_p6 = scmp.lt.u32.totalorder %s246_s30, %s326_s4 }
 0x1c2   :  { %p252_p7 = pnand %p250_p6, %p247_p5 }
 0x1c4   :  { %255 = shalt.err (!%p252_p7)
}
 0x1c5   :  { %194 = dma.vmem_to_hbm [thread:$0]  %s192_s28, 128, %s326_s4, [#allocation5]  }
 0x1c6   :  { %256 = dma.done.wait [#allocation5], 128  }
 0x1c7   :  { %257 = vsyncadd [#allocation5], 4294967168 }
 0x1c8   :  { %198 = vsyncpa [#allocation5], 1 }

</bundles_post_ra>
